<compile_context>
chip_gen: v7x
topology: tpu7x:2x2x1
jax: 0.10.0
libtpu: 0.0.40
codegen_flags: <defaults>
</compile_context>

<pallas_src>
import jax
import jax.numpy as jnp
from jax.experimental import pallas as pl
from jax.experimental.pallas import tpu as pltpu


def _round_up(x: int, m: int) -> int:
    return ((x + m - 1) // m) * m


def _vmem_budget_bytes() -> int:
    """~75% of this chip's physical VMEM (falls back to the v7x 64 MiB)."""
    try:
        cap = int(pltpu.get_tpu_info().vmem_capacity_bytes)
    except Exception:  # interpret mode / older runtimes
        cap = 64 * 1024 * 1024
    return (cap * 3) // 4


# ---------------------------------------------------------------------------
# Kernels
# ---------------------------------------------------------------------------

def mlp_kernel_direct(x_ref, w_ref, b_ref, o_ref):
    """f32 output: accumulate straight into the resident output block."""
    k = pl.program_id(2)

    @pl.when(k == 0)
    def _():
        # Output BlockSpec ignores k -> block stays resident across reduction.
        o_ref[...] = jnp.broadcast_to(b_ref[...].astype(jnp.float32), o_ref.shape)

    # ReLU is elementwise (VPU), exact per K-chunk; matmul on the MXU with
    # f32 accumulation. astype is a no-op for the f32 path, bf16 cast for the
    # optional low-precision weight path (keeps both dot operands matched).
    x = jnp.maximum(x_ref[...], 0.0).astype(w_ref.dtype)
    o_ref[...] += jnp.dot(x, w_ref[...], preferred_element_type=jnp.float32)


def mlp_kernel_scratch(x_ref, w_ref, b_ref, o_ref, acc_ref):
    """Non-f32 outputs: f32 VMEM accumulator, single cast/store at finalize."""
    k = pl.program_id(2)

    @pl.when(k == 0)
    def _():
        acc_ref[...] = jnp.zeros_like(acc_ref)

    x = jnp.maximum(x_ref[...], 0.0).astype(w_ref.dtype)
    acc_ref[...] += jnp.dot(x, w_ref[...], preferred_element_type=jnp.float32)

    @pl.when(k == pl.num_programs(2) - 1)
    def _():
        o_ref[...] = (acc_ref[...] + b_ref[...].astype(jnp.float32)).astype(o_ref.dtype)


# ---------------------------------------------------------------------------
# Module wrapper (pads static params once; picks tiles against VMEM budget)
# ---------------------------------------------------------------------------

class PallasMLP:
    """y = relu(x) @ W.T + b with weight/bias padded once at construction."""

    def __init__(self, weight, bias, *, matmul_dtype=None):
        # weight: (output_dim, input_dim)  -- PyTorch nn.Linear layout.
        Dout, Din = weight.shape
        self.Din, self.Dout = int(Din), int(Dout)
        self.vmem_limit_bytes = _vmem_budget_bytes()

        w_dtype = matmul_dtype if matmul_dtype is not None else weight.dtype
        w_bytes = jnp.dtype(w_dtype).itemsize

        Kp128 = _round_up(self.Din, 128)
        Np128 = _round_up(self.Dout, 128)

        # N tile: collapse the N grid when the whole padded output width is
        # moderate, so x is DMA'd / ReLU'd from HBM exactly once. Otherwise
        # use 512 (a 256-multiple for the v6e/v7x 256x256 MXUs).
        n_collapse_limit = 2048 if w_bytes >= 4 else 4096
        tn = Np128 if Np128 <= n_collapse_limit else 512

        # K tile: as large as possible up to 1024 (256-multiple for the common
        # power-of-two widths), never wider than the 128-padded K.
        tk = min(1024, Kp128)

        self.tn, self.tk = tn, tk
        self.Np = _round_up(self.Dout, tn)
        self.Kp = _round_up(self.Din, tk)

        # Pad static parameters ONCE (zero K rows / N cols are exact: they add
        # nothing to the matmul; padded N cols are sliced off after the call).
        wt = jnp.asarray(weight).T.astype(w_dtype)          # (Din, Dout)
        if wt.shape != (self.Kp, self.Np):
            wt = jnp.pad(wt, ((0, self.Kp - self.Din), (0, self.Np - self.Dout)))
        b2 = jnp.asarray(bias).reshape(1, self.Dout)
        if self.Np != self.Dout:
            b2 = jnp.pad(b2, ((0, 0), (0, self.Np - self.Dout)))
        self.weight_t = wt
        self.bias2d = b2

    def _choose_tm(self, B: int, x_bytes: int) -> int:
        Mp8 = _round_up(B, 8)
        tm = min(512, Mp8)

        grid_n = self.Np // self.tn
        # v7x megacore: make sure the parallel M/N grid has >= 2 blocks for a
        # nontrivial batch so both TensorCores get work.
        if grid_n == 1 and (_round_up(B, tm) // tm) == 1 and Mp8 >= 256:
            tm = _round_up((Mp8 + 1) // 2, 8)

        # Keep the (double-buffered) working set under this chip's VMEM budget.
        w_bytes = self.weight_t.dtype.itemsize

        def working_set(tm_, tk_):
            return (2 * tm_ * tk_ * x_bytes            # x tiles (2 buffers)
                    + 2 * tk_ * self.tn * w_bytes      # W tiles (2 buffers)
                    + 2 * self.tn * 4                  # bias
                    + 3 * tm_ * self.tn * 4)           # out (+ possible acc)

        while working_set(tm, self.tk) > self.vmem_limit_bytes and tm > 8:
            tm = max(8, _round_up(tm // 2, 8))
        return tm

    def __call__(self, x):
        B, Din = x.shape
        assert Din == self.Din, (Din, self.Din)
        out_dtype = x.dtype
        x_bytes = jnp.dtype(x.dtype).itemsize

        tm = self._choose_tm(B, x_bytes)
        Mp = _round_up(B, tm)

        # Only x is padded per call (ragged M remainder + K up to the tile).
        # ReLU(0) = 0 and zero K columns contribute nothing, so this is exact;
        # padded M rows are sliced away below.
        if Mp != B or self.Kp != Din:
            x = jnp.pad(x, ((0, Mp - B), (0, self.Kp - Din)))

        grid = (Mp // tm, self.Np // self.tn, self.Kp // self.tk)

        direct = jnp.dtype(out_dtype) == jnp.dtype(jnp.float32)
        kernel = mlp_kernel_direct if direct else mlp_kernel_scratch
        scratch = [] if direct else [pltpu.VMEM((tm, self.tn), jnp.float32)]

        out_padded = pl.pallas_call(
            kernel,
            out_shape=jax.ShapeDtypeStruct((Mp, self.Np), out_dtype),
            grid_spec=pltpu.PrefetchScalarGridSpec(
                num_scalar_prefetch=0,
                grid=grid,
                in_specs=[
                    pl.BlockSpec((tm, self.tk), lambda i, j, k: (i, k)),       # x
                    pl.BlockSpec((self.tk, self.tn), lambda i, j, k: (k, j)),  # W
                    pl.BlockSpec((1, self.tn), lambda i, j, k: (0, j)),        # b
                ],
                out_specs=pl.BlockSpec((tm, self.tn), lambda i, j, k: (i, j)),
                scratch_shapes=scratch,
            ),
            compiler_params=pltpu.CompilerParams(
                dimension_semantics=("parallel", "parallel", "arbitrary"),
                vmem_limit_bytes=self.vmem_limit_bytes,
            ),
        )(x, self.weight_t, self.bias2d)

        return out_padded[:B, :self.Dout]


def reference_mlp(x, weight, bias):
    return jnp.maximum(x, 0.0) @ weight.T + bias.reshape(1, -1)


if __name__ == "__main__":
    key = jax.random.PRNGKey(0)

    def make_case(key, batch, input_dim, output_dim):
        k_x, k_w, k_b = jax.random.split(key, 3)
        bound = 1.0 / (input_dim ** 0.5)
        # PyTorch nn.Linear stores weight as (out, in).
        weight = jax.random.uniform(
            k_w, (output_dim, input_dim), jnp.float32, minval=-bound, maxval=bound)
        bias = jax.random.uniform(
            k_b, (output_dim,), jnp.float32, minval=-bound, maxval=bound)
        x = jax.random.normal(k_x, (batch, input_dim), jnp.float32)
        return x, weight, bias

    k1, k2 = jax.random.split(key)

    # Case 1: tiny module-scale shapes -> exercised via the padding path,
    # single-tile grid, direct-into-output accumulation.
    x, w, b = make_case(k1, batch=4, input_dim=32, output_dim=16)
    mlp = PallasMLP(w, b)
    out = jax.block_until_ready(mlp(x))
    ref = reference_mlp(x, w, b)
    assert out.shape == ref.shape
    assert jnp.allclose(out, ref, atol=1e-3, rtol=1e-3)

    # Case 2: larger shapes -> collapsed N grid (tn = Np = 512), big K tile,
    # >=2 parallel M blocks for megacore, f32 direct-output accumulation.
    x, w, b = make_case(k2, batch=256, input_dim=512, output_dim=512)
    mlp = PallasMLP(w, b)
    out = jax.block_until_ready(mlp(x))
    ref = reference_mlp(x, w, b)
    assert out.shape == ref.shape
    assert jnp.allclose(out, ref, atol=1e-3, rtol=1e-3)

    print("KERNEL_OK")
</pallas_src>

<mosaic_0001>
module attributes {stable_mosaic.version = 11 : i64} {
  func.func @mlp_kernel_direct(%arg0: i32, %arg1: i32, %arg2: i32, %arg3: memref<8x128xf32, #tpu.memory_space<vmem>>, %arg4: memref<128x128xf32, #tpu.memory_space<vmem>>, %arg5: memref<1x128xf32, #tpu.memory_space<vmem>>, %arg6: memref<8x128xf32, #tpu.memory_space<vmem>>) attributes {dimension_semantics = [#tpu.dimension_semantics<parallel>, #tpu.dimension_semantics<parallel>, #tpu.dimension_semantics<arbitrary>], iteration_bounds = array<i64: 1, 1, 1>, scalar_prefetch = 0 : i64, scratch_operands = 0 : i64, tpu.core_type = #tpu.core_type<tc>, window_params = [{transform_indices = @transform_0, window_bounds = array<i64: 8, 128>}, {transform_indices = @transform_1, window_bounds = array<i64: 128, 128>}, {transform_indices = @transform_2, window_bounds = array<i64: 1, 128>}, {transform_indices = @transform_3, window_bounds = array<i64: 8, 128>}]} {
    %c0_i32 = arith.constant 0 : i32
    %0 = arith.cmpi eq, %arg2, %c0_i32 : i32
    %1 = arith.extui %0 : i1 to i32
    %c0_i32_0 = arith.constant 0 : i32
    %2 = arith.cmpi ne, %1, %c0_i32_0 : i32
    scf.if %2 {
      %c0_9 = arith.constant 0 : index
      %c0_10 = arith.constant 0 : index
      %11 = vector.load %arg5[%c0_9, %c0_10] : memref<1x128xf32, #tpu.memory_space<vmem>>, vector<1x128xf32>
      %12 = vector.shape_cast %11 : vector<1x128xf32> to vector<1x128xf32>
      %13 = vector.broadcast %12 : vector<1x128xf32> to vector<8x128xf32>
      %c0_11 = arith.constant 0 : index
      %c0_12 = arith.constant 0 : index
      %14 = vector.load %arg6[%c0_11, %c0_12] : memref<8x128xf32, #tpu.memory_space<vmem>>, vector<8x128xf32>
      tpu.vector_store %arg6[%c0_11, %c0_12], %13 {strides = array<i32>} : memref<8x128xf32, #tpu.memory_space<vmem>>, vector<8x128xf32>,
    } else {
    }
    %c0 = arith.constant 0 : index
    %c0_1 = arith.constant 0 : index
    %3 = vector.load %arg3[%c0, %c0_1] : memref<8x128xf32, #tpu.memory_space<vmem>>, vector<8x128xf32>
    %cst = arith.constant 0.000000e+00 : f32
    %4 = vector.broadcast %cst : f32 to vector<8x128xf32>
    %5 = arith.maximumf %3, %4 : vector<8x128xf32>
    %c0_2 = arith.constant 0 : index
    %c0_3 = arith.constant 0 : index
    %6 = vector.load %arg6[%c0_2, %c0_3] : memref<8x128xf32, #tpu.memory_space<vmem>>, vector<8x128xf32>
    %c0_4 = arith.constant 0 : index
    %c0_5 = arith.constant 0 : index
    %7 = vector.load %arg4[%c0_4, %c0_5] : memref<128x128xf32, #tpu.memory_space<vmem>>, vector<128x128xf32>
    %cst_6 = arith.constant dense<0.000000e+00> : vector<8x128xf32>
    %8 = tpu.matmul %5, %7, %cst_6 {dimension_numbers = #tpu.dot_dimension_numbers<[1], [0], [0], [1], [0, 0, 1, 1], [], []>} : vector<8x128xf32>, vector<128x128xf32>, vector<8x128xf32> -> vector<8x128xf32>
    %9 = arith.addf %6, %8 : vector<8x128xf32>
    %c0_7 = arith.constant 0 : index
    %c0_8 = arith.constant 0 : index
    %10 = vector.load %arg6[%c0_7, %c0_8] : memref<8x128xf32, #tpu.memory_space<vmem>>, vector<8x128xf32>
    tpu.vector_store %arg6[%c0_7, %c0_8], %9 {strides = array<i32>} : memref<8x128xf32, #tpu.memory_space<vmem>>, vector<8x128xf32>,
    return
  }
  func.func @transform_0(%arg0: i32, %arg1: i32, %arg2: i32) -> (i32, i32) {
    %c0_i32 = arith.constant 0 : i32
    return %arg0, %arg2 : i32, i32
  }
  func.func @transform_1(%arg0: i32, %arg1: i32, %arg2: i32) -> (i32, i32) {
    %c0_i32 = arith.constant 0 : i32
    return %arg2, %arg1 : i32, i32
  }
  func.func @transform_2(%arg0: i32, %arg1: i32, %arg2: i32) -> (i32, i32) {
    %c0_i32 = arith.constant 0 : i32
    %c0_i32_0 = arith.constant 0 : i32
    return %c0_i32, %arg1 : i32, i32
  }
  func.func @transform_3(%arg0: i32, %arg1: i32, %arg2: i32) -> (i32, i32) {
    %c0_i32 = arith.constant 0 : i32
    return %arg0, %arg1 : i32, i32
  }
}

</mosaic_0001>

<bundles_post_ra>
// kernel: tpu_custom_call.1
= control target key start
LH: loop header
LB: loop body
LE: loop exit
PB: predicated region body
PF: predicated region fallthrough
CT: control target
= control target key end

     0   :  { %8 = vsyncpa [#allocation3], 0  ;;  %s391_s0 = inlined_call_operand.hbm [shape: f32[8,128], index: 0, kind: input, shape index: {}]   ;;  %s392_s1 = inlined_call_operand.hbm [shape: f32[128,128], index: 1, kind: input, shape index: {}]   ;;  %s393_s2 = inlined_call_operand.vmem [shape: f32[1,128], index: 2, kind: input, shape index: {}]   ;;  %s394_s3 = inlined_call_operand.hbm [shape: f32[8,128], index: 3, kind: output, shape index: {}]  }
   0x1   :  { %9 = vsyncpa [#allocation6], 0 }
   0x2   :  { %10 = vsyncpa [#allocation4], 0  ;;  %s317_s12 = smov [#allocation2]   ;;  %s318_s14 = smov [#allocation5]  }
   0x3   :  { %s17_s13 = sshll.u32 %s317_s12, 4  ;;  %s26_s15 = sshll.u32 %s318_s14, 4  ;;  %s18_s13 = int_to_ptr.vmem [resolvable:$true] %s17_s13  ;;  %s345_s15 = int_to_ptr.vmem [resolvable:$true] %s26_s15 }
   0x4   :  { %s245_s18 = scalar_lea.hbm %s391_s0, 128 }
   0x5   :  { %p246_p0 = scmp.ne.s32.totalorder %s391_s0, %s245_s18  ;;  %p249_p1 = scmp.lt.u32.totalorder %s245_s18, %s391_s0 }
   0x7   :  { %p251_p2 = pnand %p249_p1, %p246_p0 }
   0x9   :  { %254 = shalt.err (!%p251_p2)
}
   0xa   :  { %s255_s23 = scalar_lea.vmem %s18_s13, 128  ;;  %p260_p4 = scmp.lt.s32.totalorder %s18_s13, %s18_s13 }
   0xb   :  { %p256_p3 = scmp.ne.s32.totalorder %s18_s13, %s255_s23  ;;  %p261_p5 = scmp.lt.s32.totalorder %s255_s23, %s255_s23 }
   0xd   :  { %p262_p6 = por %p261_p5, %p260_p4 }
   0xf   :  { %p263_p7 = pnand %p262_p6, %p256_p3 }
  0x11   :  { %266 = shalt.err (!%p263_p7)
}
  0x12   :  { %20 = dma.hbm_to_vmem [thread:$0]  %s391_s0, 128, %s18_s13, [#allocation3]  }
  0x13   :  { %s267_s28 = scalar_lea.hbm %s392_s1, 2048 }
  0x14   :  { %p268_p8 = scmp.ne.s32.totalorder %s392_s1, %s267_s28  ;;  %p271_p9 = scmp.lt.u32.totalorder %s267_s28, %s392_s1 }
  0x16   :  { %p273_p10 = pnand %p271_p9, %p268_p8 }
  0x18   :  { %276 = shalt.err (!%p273_p10)
}
  0x19   :  { %s277_s6 = scalar_lea.vmem %s345_s15, 2048  ;;  %p282_p12 = scmp.lt.s32.totalorder %s345_s15, %s345_s15 }
  0x1a   :  { %p278_p11 = scmp.ne.s32.totalorder %s345_s15, %s277_s6  ;;  %p283_p13 = scmp.lt.s32.totalorder %s277_s6, %s277_s6 }
  0x1c   :  { %p284_p0 = por %p283_p13, %p282_p12 }
  0x1e   :  { %p285_p1 = pnand %p284_p0, %p278_p11 }
  0x20   :  { %288 = shalt.err (!%p285_p1)
}
  0x21   :  { %s319_s0 = smov 128   ;;  %s320_s7 = smov 8  }
  0x22   :  { %32 = dma.hbm_to_vmem [thread:$0]  %s392_s1, 2048, %s345_s15, [#allocation6], %s319_s0, %s319_s0, %s320_s7  }
  0x23   :  { %311 = dma.done.wait [#allocation3], 128  }
  0x24   :  { %312 = vsyncadd [#allocation3], 4294967168 }
  0x25   :  { %313 = dma.done.wait [#allocation6], 2048  }
  0x26   :  { %314 = vsyncadd [#allocation6], 4294965248  ;;  %v321_v0 = vmov 0.0|0.0   ;;  %vm322_vm0 = vmmov 0   ;;  %v323_v1 = vmov 0.0   ;;  %v56_v2 = vld [vmem:[#allocation5] sm:$0xff] }
  0x27   :  { %213 = vmatprep.subr.bf16.mxu0 %v321_v0  ;;  %210 = vmatprep.mubr.msk.f32.mxu0 %vm322_vm0, %v323_v1  ;;  %v57_v3 = vld [vmem:[#allocation5 + $0x8] sm:$0xff]  ;;  %v58_v4 = vld [vmem:[#allocation5 + $0x10] sm:$0xff]  ;;  %v59_v6 = vld [vmem:[#allocation5 + $0x18] sm:$0xff]  ;;  %s324_s11 = smov [#allocation7]  }
  0x28   :  { %v214_v5 = vpack.c.bf16 %v57_v3, %v56_v2  ;;  %v217_v7 = vpack.c.bf16 %v59_v6, %v58_v4  ;;  %v60_v8 = vld [vmem:[#allocation5 + $0x20] sm:$0xff]  ;;  %v61_v9 = vld [vmem:[#allocation5 + $0x28] sm:$0xff]  ;;  %v62_v11 = vld [vmem:[#allocation5 + $0x30] sm:$0xff]  ;;  %s150_s12 = sshll.u32 %s324_s11, 4  ;;  %s151_s12 = int_to_ptr.vmem [resolvable:$true] %s150_s12 }
  0x29   :  { %v220_v10 = vpack.c.bf16 %v61_v9, %v60_v8  ;;  %v63_v12 = vld [vmem:[#allocation5 + $0x38] sm:$0xff]  ;;  %v64_v14 = vld [vmem:[#allocation5 + $0x40] sm:$0xff]  ;;  %v65_v15 = vld [vmem:[#allocation5 + $0x48] sm:$0xff]  ;;  %s289_s13 = scalar_lea.vmem %s151_s12, 128  ;;  %p294_p3 = scmp.lt.s32.totalorder %s151_s12, %s151_s12 }
  0x2a   :  { %215 = vmatpush3.bf16.msra.mxu0 %v214_v5  ;;  %v223_v13 = vpack.c.bf16 %v63_v12, %v62_v11  ;;  %v226_v16 = vpack.c.bf16 %v65_v15, %v64_v14  ;;  %v66_v17 = vld [vmem:[#allocation5 + $0x50] sm:$0xff]  ;;  %v67_v18 = vld [vmem:[#allocation5 + $0x58] sm:$0xff]  ;;  %v68_v20 = vld [vmem:[#allocation5 + $0x60] sm:$0xff]  ;;  %p290_p2 = scmp.ne.s32.totalorder %s151_s12, %s289_s13  ;;  %p295_p4 = scmp.lt.s32.totalorder %s289_s13, %s289_s13 }
  0x2b   :  { %216 = vmatprep.subr.bf16.mxu0 %v321_v0  ;;  %v229_v19 = vpack.c.bf16 %v67_v18, %v66_v17  ;;  %v69_v21 = vld [vmem:[#allocation5 + $0x68] sm:$0xff]  ;;  %v70_v23 = vld [vmem:[#allocation5 + $0x70] sm:$0xff]  ;;  %v71_v24 = vld [vmem:[#allocation5 + $0x78] sm:$0xff] }
  0x2c   :  { %v232_v22 = vpack.c.bf16 %v69_v21, %v68_v20  ;;  %v235_v25 = vpack.c.bf16 %v71_v24, %v70_v23  ;;  %v53_v26 = vld [vmem:[#allocation2] sm:$0xff]  ;;  %p296_p5 = por %p295_p4, %p294_p3 }
  0x2d   :  { %v54_v27 = vmax.f32 %v53_v26, 0.0  ;;  %v160_v28 = vld [vmem:[%s393_s2] ss:$0 sm:$0xff] }
  0x2e   :  { %218 = vmatpush3.bf16.msra.mxu0 %v217_v7  ;;  %p297_p6 = pnand %p296_p5, %p290_p2 }
  0x2f   :  { %219 = vmatprep.subr.bf16.mxu0 %v321_v0 }
  0x32   :  { %221 = vmatpush3.bf16.msra.mxu0 %v220_v10 }
  0x33   :  { %222 = vmatprep.subr.bf16.mxu0 %v321_v0 }
  0x36   :  { %224 = vmatpush3.bf16.msra.mxu0 %v223_v13 }
  0x37   :  { %225 = vmatprep.subr.bf16.mxu0 %v321_v0 }
  0x3a   :  { %227 = vmatpush3.bf16.msra.mxu0 %v226_v16 }
  0x3b   :  { %228 = vmatprep.subr.bf16.mxu0 %v321_v0 }
  0x3e   :  { %230 = vmatpush3.bf16.msra.mxu0 %v229_v19 }
  0x3f   :  { %231 = vmatprep.subr.bf16.mxu0 %v321_v0 }
  0x42   :  { %233 = vmatpush3.bf16.msra.mxu0 %v232_v22 }
  0x43   :  { %234 = vmatprep.subr.bf16.mxu0 %v321_v0 }
  0x46   :  { %236 = vmatpush3.bf16.msra.mxu0 %v235_v25 }
  0x49   :  { %211 = vmatmul.mubr.f32.vlgmr.msra.gmra.mrb[0].mxu0 %v54_v27 }
 0x11c   :  { %v138_v29 = vpop.f32.mrb[0].mxu0 }
 0x11d   :  { %v142_v30 = vadd.f32 %v160_v28, %v138_v29  ;;  %v212_v31 = vpop.f32.mrb[1].mxu0 }
 0x11f   :  { %143 = vst [vmem:[#allocation7] sm:$0xff] %v142_v30 }
 0x120   :  { %300 = shalt.err (!%p297_p6)
}
 0x121   :  { %s301_s16 = scalar_lea.hbm %s394_s3, 128 }
 0x122   :  { %p302_p7 = scmp.ne.s32.totalorder %s394_s3, %s301_s16  ;;  %p305_p8 = scmp.lt.u32.totalorder %s301_s16, %s394_s3 }
 0x124   :  { %p307_p9 = pnand %p305_p8, %p302_p7 }
 0x126   :  { %310 = shalt.err (!%p307_p9)
}
 0x127   :  { %153 = dma.vmem_to_hbm [thread:$0]  %s151_s12, 128, %s394_s3, [#allocation4]  }
 0x128   :  { %315 = dma.done.wait [#allocation4], 128  }
 0x129   :  { %316 = vsyncadd [#allocation4], 4294967168 }
 0x12a   :  { %157 = vsyncpa [#allocation3], 1 }
 0x12b   :  { %158 = vsyncpa [#allocation6], 1 }
 0x12c   :  { %159 = vsyncpa [#allocation4], 1 }

</bundles_post_ra>
